<compile_context>
chip_gen: v6e
topology: v6e:2x2x1
jax: 0.10.0
libtpu: 0.0.40
codegen_flags: <defaults>
</compile_context>

<pallas_src>
import functools
import math
from typing import Optional, Sequence, Union

import jax
import jax.numpy as jnp
from jax.experimental import pallas as pl
from jax.experimental.pallas import tpu as pltpu


# ----------------------------------------------------------------------------
# Pallas kernel
# ----------------------------------------------------------------------------
def _specaug_mask_kernel(fpos_ref, flen_ref, tpos_ref, tlen_ref,
                         fbin_ref, foff_ref, spec_ref, out_ref,
                         *, n_freq_masks, n_time_masks, row_scale,
                         batch_block, n_batch):
    """Zero-fill the union of freq/time masks for one (batch-tile, row-tile).

    spec_ref/out_ref : (batch_block, block_rows, cols), cols = row_scale * F
                       (lane-dense packing of row_scale consecutive frames).
    fbin_ref         : (1, cols) int32, frequency bin of each lane (lane % F).
    foff_ref         : (1, cols) int32, frame offset within a packed row.
    fpos/flen/tpos/tlen : flattened (B * n_masks,) int32 scalars in SMEM.
    """
    bb = pl.program_id(0)
    tt = pl.program_id(1)
    _, rows, cols = spec_ref.shape

    f_idx = fbin_ref[...]                                   # (1, cols)
    # Global frame index of element (r, lane) = row_scale*(tt*rows + r) + foff.
    rbase = (jax.lax.broadcasted_iota(jnp.int32, (rows, 1), 0)
             + tt * rows) * row_scale                       # (rows, 1)
    if row_scale > 1:
        foff = foff_ref[...]                                # (1, cols)

    zero = jnp.array(0, dtype=spec_ref.dtype)

    # Unrolled loop over the batch sub-block: amortizes the per-grid-step
    # overhead over batch_block tiles (perf review item #1).
    for bi in range(batch_block):
        # Clamp so a ragged final batch tile never indexes SMEM out of range;
        # its data rows are padding and their stores are dropped anyway.
        b = jnp.minimum(bb * batch_block + bi, n_batch - 1)

        # ---- frequency mask: separable, a single (1, cols) row ----
        fmask = jnp.zeros((1, cols), dtype=jnp.bool_)
        for m in range(n_freq_masks):
            p = fpos_ref[b * n_freq_masks + m]
            l = flen_ref[b * n_freq_masks + m]
            fmask = fmask | ((p <= f_idx) & (f_idx < p + l))

        # ---- time mask ----
        if row_scale == 1:
            # Fully separable: depends only on the row index.
            tmask = jnp.zeros((rows, 1), dtype=jnp.bool_)
            for m in range(n_time_masks):
                p = tpos_ref[b * n_time_masks + m]
                l = tlen_ref[b * n_time_masks + m]
                tmask = tmask | ((p <= rbase) & (rbase < p + l))
        else:
            tmask = jnp.zeros((rows, cols), dtype=jnp.bool_)
            for m in range(n_time_masks):
                p = tpos_ref[b * n_time_masks + m]
                l = tlen_ref[b * n_time_masks + m]
                # p <= row_scale*row + foff < p + l
                tmask = tmask | (((p - foff) <= rbase) & (rbase < (p + l - foff)))

        out_ref[bi] = jnp.where(fmask | tmask, zero, spec_ref[bi])


# ----------------------------------------------------------------------------
# Wrapper
# ----------------------------------------------------------------------------
def _default_target_block_bytes():
    """Generation-aware DMA tile budget (perf review items #2/#3)."""
    try:
        kind = jax.devices()[0].device_kind.lower()
    except Exception:
        return 2 * 1024 * 1024
    if "v5 lite" in kind or "v5e" in kind or "v5lite" in kind:
        return 3 * 1024 * 1024          # v5e: 16 MiB scoped-VMEM default
    if "v7" in kind or "tpu7" in kind:
        return 8 * 1024 * 1024          # v7x: 64 MiB physical VMEM, ~3.2 TB/s HBM
    return 4 * 1024 * 1024              # v6e and others


def specaug_apply_masks(spec, fpos, flen, tpos, tlen, *,
                        batch_block=None, block_rows=None,
                        target_block_bytes=None, donate_spec=False):
    """Zero out frequency and time masks of `spec`.

    spec: (B, T, F); fpos/flen: (B, NF) int; tpos/tlen: (B, NT) int.
    Equivalent to mask_along_axis_lfr(dim=2) followed by (dim=1) with
    replace_with_zero=True.

    donate_spec: set True only if the caller actually donates `spec`
    (e.g. jax.jit(..., donate_argnums=...)); otherwise XLA inserts a defensive
    full-tensor copy in front of the kernel and aliasing is a net loss.
    """
    assert spec.ndim == 3, "expected (B, T, F)"
    B, T, F = spec.shape
    n_freq = fpos.shape[-1]
    n_time = tpos.shape[-1]
    assert fpos.shape == (B, n_freq) and flen.shape == (B, n_freq)
    assert tpos.shape == (B, n_time) and tlen.shape == (B, n_time)

    # Lane-dense packing: fold R consecutive frames into the lane axis so the
    # last dim is a multiple of 128.  If T is not divisible by R, pad the time
    # axis (<= R-1 frames) and slice afterwards; lane-sparse stores/DMAs cost
    # far more than the tiny pad (perf review item on the unpacked fallback).
    R = 128 // math.gcd(F, 128)
    T_pad = ((T + R - 1) // R) * R
    x = spec
    if T_pad != T:
        x = jnp.pad(x, ((0, 0), (0, T_pad - T), (0, 0)))
    cols = R * F
    n_rows = T_pad // R
    x2 = x.reshape(B, n_rows, cols)

    # ---- tiling: generation-aware tile size, batch packing, >= 2 grid steps --
    itemsize = spec.dtype.itemsize
    if target_block_bytes is None:
        target_block_bytes = _default_target_block_bytes()
    align = 8 * max(1, 4 // itemsize)      # sublane align: f32->8, bf16->16, i8->32
    row_bytes = cols * itemsize

    if block_rows is None:
        if n_rows * row_bytes >= target_block_bytes:
            rows = max(align, (target_block_bytes // row_bytes) // align * align)
            block_rows = min(rows, n_rows)
        else:
            block_rows = n_rows            # full-extent block is always legal
    block_rows = min(int(block_rows), n_rows)

    if batch_block is None:
        per_batch_tile = block_rows * row_bytes
        batch_block = max(1, min(B, target_block_bytes // max(1, per_batch_tile)))
    batch_block = max(1, min(int(batch_block), B))

    # Guarantee >= 2 grid steps whenever possible: with a single step the
    # "parallel" semantics cannot spread work across both v7x TensorCores.
    if pl.cdiv(B, batch_block) * pl.cdiv(n_rows, block_rows) < 2:
        if batch_block > 1:
            batch_block = (batch_block + 1) // 2
        elif n_rows > align:
            block_rows = (((n_rows + 1) // 2) + align - 1) // align * align

    grid = (pl.cdiv(B, batch_block), pl.cdiv(n_rows, block_rows))

    # Double-buffered in + out tiles plus slack.  Keep the default Buffered(2)
    # pipelining; spend the VMEM budget on tile size, not buffer depth.
    tile_bytes = batch_block * block_rows * row_bytes
    vmem_limit = int(max(16 << 20, 4 * tile_bytes + (8 << 20)))

    # Per-lane frequency bin and packed-frame offset (tiny constant rows).
    fbin_row = jnp.tile(jnp.arange(F, dtype=jnp.int32), R)[None, :]    # (1, cols)
    foff_row = jnp.repeat(jnp.arange(R, dtype=jnp.int32), F)[None, :]  # (1, cols)

    # 1-D scalar prefetch arrays (SMEM-friendly layout, no 2-D SMEM padding).
    fpos1 = jnp.asarray(fpos, jnp.int32).reshape(-1)
    flen1 = jnp.asarray(flen, jnp.int32).reshape(-1)
    tpos1 = jnp.asarray(tpos, jnp.int32).reshape(-1)
    tlen1 = jnp.asarray(tlen, jnp.int32).reshape(-1)

    kernel = functools.partial(_specaug_mask_kernel,
                               n_freq_masks=n_freq, n_time_masks=n_time,
                               row_scale=R, batch_block=batch_block, n_batch=B)

    data_spec = pl.BlockSpec((batch_block, block_rows, cols),
                             lambda b, t, *_: (b, t, 0))
    row_spec = pl.BlockSpec((1, cols), lambda b, t, *_: (0, 0))

    out = pl.pallas_call(
        kernel,
        out_shape=jax.ShapeDtypeStruct(x2.shape, x2.dtype),
        grid_spec=pltpu.PrefetchScalarGridSpec(
            num_scalar_prefetch=4,
            grid=grid,
            in_specs=[row_spec, row_spec, data_spec],
            out_specs=data_spec,
        ),
        compiler_params=pltpu.CompilerParams(
            dimension_semantics=("parallel", "parallel"),
            vmem_limit_bytes=vmem_limit),
        # Operand 6 = 4 scalar-prefetch arrays + 2 index rows, then the packed
        # spectrogram.  Only aliased when the caller guarantees donation.
        input_output_aliases=({6: 0} if donate_spec else {}),
    )(fpos1, flen1, tpos1, tlen1, fbin_row, foff_row, x2)

    out = out.reshape(B, T_pad, F)
    if T_pad != T:
        out = out[:, :T, :]
    return out


# ----------------------------------------------------------------------------
# Glue: sample mask params mirroring mask_along_axis_lfr semantics (jit-safe).
# ----------------------------------------------------------------------------
def _sample_mask_params_lfr(key, B, axis_size, mask_width_range, num_mask,
                            lfr_rate=1):
    """Returns (mask_pos, mask_length), each (B, lfr_rate * num_mask) int32."""
    kl, kp = jax.random.split(key)
    w0, w1 = mask_width_range
    D = axis_size // max(1, lfr_rate)
    mask_length = jax.random.randint(kl, (B, num_mask), w0, w1, dtype=jnp.int32)
    # torch: randint(0, max(1, D - mask_length.max())).  Use the static worst
    # case (max sampled length is w1 - 1) so this stays jit-compatible.
    high = max(1, D - (w1 - 1))
    mask_pos = jax.random.randint(kp, (B, num_mask), 0, high, dtype=jnp.int32)
    if lfr_rate > 1:
        mask_length = jnp.tile(mask_length, (1, lfr_rate))
        mask_pos = jnp.concatenate([mask_pos + D * i for i in range(lfr_rate)],
                                   axis=1)
    return mask_pos, mask_length


# ----------------------------------------------------------------------------
# Pure-JAX reference (also used as the tiny-input fallback path)
# ----------------------------------------------------------------------------
def _reference_apply(x, fpos, flen, tpos, tlen):
    B, T, F = x.shape
    zero = jnp.array(0, dtype=x.dtype)
    f_ar = jnp.arange(F)[None, None, :]
    fmask = jnp.any((fpos[:, :, None] <= f_ar) &
                    (f_ar < fpos[:, :, None] + flen[:, :, None]), axis=1)  # (B, F)
    t_ar = jnp.arange(T)[None, None, :]
    tmask = jnp.any((tpos[:, :, None] <= t_ar) &
                    (t_ar < tpos[:, :, None] + tlen[:, :, None]), axis=1)  # (B, T)
    x = jnp.where(fmask[:, None, :], zero, x)   # freq mask (dim=2)
    x = jnp.where(tmask[:, :, None], zero, x)   # time mask (dim=1)
    return x


# ----------------------------------------------------------------------------
# Module port
# ----------------------------------------------------------------------------
class SpecAugLFRPallas:
    """JAX/Pallas port of SpecAugLFR's forward pass (freq + time masking).

    Only replace_with_zero=True (the module default) is supported.  __call__
    takes an explicit PRNGKey and additionally returns the sampled mask
    parameters (useful for testing).
    """

    def __init__(self,
                 apply_time_warp: bool = False,
                 time_warp_window: int = 5,
                 time_warp_mode: str = "bicubic",
                 apply_freq_mask: bool = True,
                 freq_mask_width_range: Union[int, Sequence[int]] = (0, 20),
                 num_freq_mask: int = 2,
                 lfr_rate: int = 0,
                 apply_time_mask: bool = True,
                 time_mask_width_range: Optional[Union[int, Sequence[int]]] = None,
                 time_mask_width_ratio_range: Optional[Union[float, Sequence[float]]] = None,
                 num_time_mask: int = 2,
                 pallas_min_bytes: int = 1 * 1024 * 1024):
        if not apply_time_warp and not apply_time_mask and not apply_freq_mask:
            raise ValueError(
                "Either one of time_warp, time_mask, or freq_mask should be applied")
        if apply_time_warp:
            # TODO(synk): TimeWarp (bicubic time-axis interpolation) is not part
            # of the provided reference source; not implemented in this port.
            raise NotImplementedError("TimeWarp is not available in this port")
        if (apply_time_mask and time_mask_width_range is not None
                and time_mask_width_ratio_range is not None):
            raise ValueError('Either one of "time_mask_width_range" or '
                             '"time_mask_width_ratio_range" can be used')
        if isinstance(freq_mask_width_range, int):
            freq_mask_width_range = (0, freq_mask_width_range)
        if isinstance(time_mask_width_range, int):
            time_mask_width_range = (0, time_mask_width_range)
        if isinstance(time_mask_width_ratio_range, float):
            time_mask_width_ratio_range = (0.0, time_mask_width_ratio_range)
        if apply_freq_mask:
            assert freq_mask_width_range[1] > freq_mask_width_range[0]
        if apply_time_mask:
            if time_mask_width_range is None and time_mask_width_ratio_range is None:
                raise ValueError('Either one of "time_mask_width_range" or '
                                 '"time_mask_width_ratio_range" should be used.')
            if time_mask_width_range is not None:
                assert time_mask_width_range[1] > time_mask_width_range[0]

        self.apply_freq_mask = apply_freq_mask
        self.apply_time_mask = apply_time_mask
        self.freq_mask_width_range = tuple(freq_mask_width_range)
        self.time_mask_width_range = (tuple(time_mask_width_range)
                                      if time_mask_width_range is not None else None)
        self.time_mask_width_ratio_range = (
            tuple(time_mask_width_ratio_range)
            if time_mask_width_ratio_range is not None else None)
        self.num_freq_mask = num_freq_mask
        self.num_time_mask = num_time_mask
        # Reference: freq mask uses lfr_rate + 1; dim='time' forces lfr_rate = 1.
        self.freq_lfr_rate = lfr_rate + 1
        self.time_lfr_rate = 1
        self.pallas_min_bytes = pallas_min_bytes

    def __call__(self, key, x, x_lengths=None):
        org_shape = x.shape
        if x.ndim == 4:
            x = x.reshape(-1, x.shape[2], x.shape[3])
        B, T, F = x.shape
        kf, kt = jax.random.split(key)

        def _dummy():
            return jnp.zeros((B, 1), jnp.int32), jnp.zeros((B, 1), jnp.int32)

        if self.apply_freq_mask:
            fpos, flen = _sample_mask_params_lfr(
                kf, B, F, self.freq_mask_width_range,
                self.num_freq_mask, self.freq_lfr_rate)
        else:
            fpos, flen = _dummy()

        if self.apply_time_mask:
            if self.time_mask_width_range is not None:
                t_range = self.time_mask_width_range
            else:
                r0, r1 = self.time_mask_width_ratio_range
                lo = max(0, math.floor(T * r0))
                hi = min(T, math.floor(T * r1))
                t_range = (lo, hi) if hi > lo else None
            if t_range is not None:
                tpos, tlen = _sample_mask_params_lfr(
                    kt, B, T, t_range, self.num_time_mask, self.time_lfr_rate)
            else:
                tpos, tlen = _dummy()
        else:
            tpos, tlen = _dummy()

        if x.size * x.dtype.itemsize < self.pallas_min_bytes:
            # Tiny input: a fused XLA elementwise pass is already at roofline;
            # pallas_call launch / per-step overhead would dominate.
            out = _reference_apply(x, fpos, flen, tpos, tlen)
        else:
            out = specaug_apply_masks(x, fpos, flen, tpos, tlen)
        out = out.reshape(org_shape)
        return out, x_lengths, (fpos, flen, tpos, tlen)


# ----------------------------------------------------------------------------
# Self-test
# ----------------------------------------------------------------------------
if __name__ == "__main__":
    root = jax.random.PRNGKey(0)

    def check(x, fpos, flen, tpos, tlen, **kw):
        out = jax.block_until_ready(
            specaug_apply_masks(x, fpos, flen, tpos, tlen, **kw))
        ref = _reference_apply(x, fpos, flen, tpos, tlen)
        assert out.shape == x.shape and out.dtype == x.dtype
        assert jnp.array_equal(out, ref), "Pallas output mismatch vs JAX reference"

    # ---- A: tiny (2, 32, 80): packed (R=8), auto tiling, forced >=2 steps ----
    kx, ka = jax.random.split(jax.random.fold_in(root, 0))
    x = jax.random.normal(kx, (2, 32, 80), jnp.float32)
    fpos, flen = _sample_mask_params_lfr(jax.random.fold_in(ka, 1), 2, 80, (0, 20), 2)
    tpos, tlen = _sample_mask_params_lfr(jax.random.fold_in(ka, 2), 2, 32, (0, 10), 2)
    check(x, fpos, flen, tpos, tlen)

    # ---- B: multiple time tiles, hand-picked masks crossing tile / packed-row
    #         boundaries, including a zero-length mask ----
    x = jax.random.normal(jax.random.fold_in(root, 1), (2, 512, 80), jnp.float32)
    fpos = jnp.array([[0, 70], [35, 10]], jnp.int32)
    flen = jnp.array([[5, 10], [0, 13]], jnp.int32)
    tpos = jnp.array([[120, 500], [0, 255]], jnp.int32)
    tlen = jnp.array([[20, 12], [7, 9]], jnp.int32)
    check(x, fpos, flen, tpos, tlen, batch_block=1, block_rows=16)

    # ---- C: ragged batch tile (B=3, batch_block=2) AND ragged time tile ----
    kx, ka = jax.random.split(jax.random.fold_in(root, 2))
    x = jax.random.normal(kx, (3, 200, 80), jnp.float32)
    fpos, flen = _sample_mask_params_lfr(jax.random.fold_in(ka, 1), 3, 80, (0, 20), 2)
    tpos, tlen = _sample_mask_params_lfr(jax.random.fold_in(ka, 2), 3, 200, (0, 10), 2)
    check(x, fpos, flen, tpos, tlen, batch_block=2, block_rows=16)

    # ---- D: T not divisible by the pack factor -> padded, stays lane-dense ----
    kx, ka = jax.random.split(jax.random.fold_in(root, 3))
    x = jax.random.normal(kx, (2, 61, 80), jnp.float32)
    fpos, flen = _sample_mask_params_lfr(jax.random.fold_in(ka, 1), 2, 80, (0, 20), 2)
    tpos, tlen = _sample_mask_params_lfr(jax.random.fold_in(ka, 2), 2, 61, (0, 10), 2)
    check(x, fpos, flen, tpos, tlen)

    # ---- E: F already lane-dense (R == 1, separable time-mask path) ----
    kx, ka = jax.random.split(jax.random.fold_in(root, 4))
    x = jax.random.normal(kx, (2, 100, 128), jnp.float32)
    fpos, flen = _sample_mask_params_lfr(jax.random.fold_in(ka, 1), 2, 128, (0, 20), 2)
    tpos, tlen = _sample_mask_params_lfr(jax.random.fold_in(ka, 2), 2, 100, (0, 10), 2)
    check(x, fpos, flen, tpos, tlen)

    # ---- F: full module forward (jit, bf16, LFR freq mask, batch packing) ----
    kx, ka = jax.random.split(jax.random.fold_in(root, 5))
    x = jax.random.normal(kx, (4, 512, 80), jnp.float32).astype(jnp.bfloat16)
    specaug = SpecAugLFRPallas(
        apply_time_warp=False,
        apply_freq_mask=True, freq_mask_width_range=(0, 20), num_freq_mask=2,
        lfr_rate=1,
        apply_time_mask=True, time_mask_width_range=(0, 10), num_time_mask=2,
        pallas_min_bytes=0)   # force the Pallas path even at this small size
    out, _, (fpos, flen, tpos, tlen) = jax.jit(specaug.__call__)(ka, x)
    out = jax.block_until_ready(out)
    ref = _reference_apply(x, fpos, flen, tpos, tlen)
    assert out.shape == x.shape and out.dtype == x.dtype
    assert jnp.array_equal(out, ref), "module forward mismatch vs JAX reference"

    # ---- G: 4-D input + tiny-input XLA fallback path of the module ----
    kx, ka = jax.random.split(jax.random.fold_in(root, 6))
    x4 = jax.random.normal(kx, (2, 1, 32, 80), jnp.float32)
    specaug_small = SpecAugLFRPallas(
        apply_time_warp=False,
        apply_freq_mask=True, freq_mask_width_range=(0, 20), num_freq_mask=2,
        apply_time_mask=True, time_mask_width_range=(0, 10), num_time_mask=2)
    out4, _, (fpos, flen, tpos, tlen) = specaug_small(ka, x4)
    out4 = jax.block_until_ready(out4)
    ref4 = _reference_apply(x4.reshape(-1, 32, 80), fpos, flen, tpos, tlen)
    assert jnp.array_equal(out4.reshape(-1, 32, 80), ref4)

    print("KERNEL_OK")
</pallas_src>

<mosaic_0001>
module attributes {stable_mosaic.version = 11 : i64} {
  func.func @_specaug_mask_kernel(%arg0: i32, %arg1: i32, %arg2: memref<4xi32, #tpu.memory_space<smem>>, %arg3: memref<4xi32, #tpu.memory_space<smem>>, %arg4: memref<4xi32, #tpu.memory_space<smem>>, %arg5: memref<4xi32, #tpu.memory_space<smem>>, %arg6: memref<1x640xi32, #tpu.memory_space<vmem>>, %arg7: memref<1x640xi32, #tpu.memory_space<vmem>>, %arg8: memref<1x4x640xf32, #tpu.memory_space<vmem>>, %arg9: memref<1x4x640xf32, #tpu.memory_space<vmem>>) attributes {dimension_semantics = [#tpu.dimension_semantics<parallel>, #tpu.dimension_semantics<parallel>], iteration_bounds = array<i64: 2, 1>, scalar_prefetch = 4 : i64, scratch_operands = 0 : i64, tpu.core_type = #tpu.core_type<tc>, window_params = [{pipeline_mode = #tpu.pipeline_mode<synchronous>, transform_indices = @transform_0, window_bounds = array<i64: 1, 640>}, {pipeline_mode = #tpu.pipeline_mode<synchronous>, transform_indices = @transform_1, window_bounds = array<i64: 1, 640>}, {transform_indices = @transform_2, window_bounds = array<i64: 1, 4, 640>}, {transform_indices = @transform_3, window_bounds = array<i64: 1, 4, 640>}]} {
    %c0 = arith.constant 0 : index
    %c0_0 = arith.constant 0 : index
    %0 = vector.load %arg6[%c0, %c0_0] : memref<1x640xi32, #tpu.memory_space<vmem>>, vector<1x640xi32>
    %1 = tpu.iota {dimensions = array<i32: 0>} : vector<4x1xi32>
    %c4_i32 = arith.constant 4 : i32
    %2 = arith.muli %arg1, %c4_i32 : i32
    %3 = vector.broadcast %2 : i32 to vector<4x1xi32>
    %4 = arith.addi %1, %3 : vector<4x1xi32>
    %c8_i32 = arith.constant 8 : i32
    %5 = vector.broadcast %c8_i32 : i32 to vector<4x1xi32>
    %6 = arith.muli %4, %5 : vector<4x1xi32>
    %c0_1 = arith.constant 0 : index
    %c0_2 = arith.constant 0 : index
    %7 = vector.load %arg7[%c0_1, %c0_2] : memref<1x640xi32, #tpu.memory_space<vmem>>, vector<1x640xi32>
    %c1_i32 = arith.constant 1 : i32
    %8 = arith.muli %arg0, %c1_i32 : i32
    %c0_i32 = arith.constant 0 : i32
    %9 = arith.addi %8, %c0_i32 : i32
    %c1_i32_3 = arith.constant 1 : i32
    %10 = arith.minsi %9, %c1_i32_3 : i32
    %false = arith.constant false
    %11 = vector.broadcast %false : i1 to vector<1x640xi1>
    %c2_i32 = arith.constant 2 : i32
    %12 = arith.muli %10, %c2_i32 : i32
    %c0_i32_4 = arith.constant 0 : i32
    %13 = arith.addi %12, %c0_i32_4 : i32
    %14 = arith.index_cast %13 : i32 to index
    %15 = memref.load %arg2[%14] : memref<4xi32, #tpu.memory_space<smem>>
    %c2_i32_5 = arith.constant 2 : i32
    %16 = arith.muli %10, %c2_i32_5 : i32
    %c0_i32_6 = arith.constant 0 : i32
    %17 = arith.addi %16, %c0_i32_6 : i32
    %18 = arith.index_cast %17 : i32 to index
    %19 = memref.load %arg3[%18] : memref<4xi32, #tpu.memory_space<smem>>
    %20 = vector.broadcast %15 : i32 to vector<1x640xi32>
    %21 = arith.cmpi sle, %20, %0 : vector<1x640xi32>
    %22 = arith.addi %15, %19 : i32
    %23 = vector.broadcast %22 : i32 to vector<1x640xi32>
    %24 = arith.cmpi slt, %0, %23 : vector<1x640xi32>
    %25 = arith.andi %21, %24 : vector<1x640xi1>
    %26 = arith.ori %11, %25 : vector<1x640xi1>
    %c2_i32_7 = arith.constant 2 : i32
    %27 = arith.muli %10, %c2_i32_7 : i32
    %c1_i32_8 = arith.constant 1 : i32
    %28 = arith.addi %27, %c1_i32_8 : i32
    %29 = arith.index_cast %28 : i32 to index
    %30 = memref.load %arg2[%29] : memref<4xi32, #tpu.memory_space<smem>>
    %c2_i32_9 = arith.constant 2 : i32
    %31 = arith.muli %10, %c2_i32_9 : i32
    %c1_i32_10 = arith.constant 1 : i32
    %32 = arith.addi %31, %c1_i32_10 : i32
    %33 = arith.index_cast %32 : i32 to index
    %34 = memref.load %arg3[%33] : memref<4xi32, #tpu.memory_space<smem>>
    %35 = vector.broadcast %30 : i32 to vector<1x640xi32>
    %36 = arith.cmpi sle, %35, %0 : vector<1x640xi32>
    %37 = arith.addi %30, %34 : i32
    %38 = vector.broadcast %37 : i32 to vector<1x640xi32>
    %39 = arith.cmpi slt, %0, %38 : vector<1x640xi32>
    %40 = arith.andi %36, %39 : vector<1x640xi1>
    %41 = arith.ori %26, %40 : vector<1x640xi1>
    %false_11 = arith.constant false
    %42 = vector.broadcast %false_11 : i1 to vector<4x640xi1>
    %c2_i32_12 = arith.constant 2 : i32
    %43 = arith.muli %10, %c2_i32_12 : i32
    %c0_i32_13 = arith.constant 0 : i32
    %44 = arith.addi %43, %c0_i32_13 : i32
    %45 = arith.index_cast %44 : i32 to index
    %46 = memref.load %arg4[%45] : memref<4xi32, #tpu.memory_space<smem>>
    %c2_i32_14 = arith.constant 2 : i32
    %47 = arith.muli %10, %c2_i32_14 : i32
    %c0_i32_15 = arith.constant 0 : i32
    %48 = arith.addi %47, %c0_i32_15 : i32
    %49 = arith.index_cast %48 : i32 to index
    %50 = memref.load %arg5[%49] : memref<4xi32, #tpu.memory_space<smem>>
    %51 = vector.broadcast %46 : i32 to vector<1x640xi32>
    %52 = arith.subi %51, %7 : vector<1x640xi32>
    %53 = vector.broadcast %52 : vector<1x640xi32> to vector<4x640xi32>
    %54 = vector.broadcast %6 : vector<4x1xi32> to vector<4x640xi32>
    %55 = arith.cmpi sle, %53, %54 : vector<4x640xi32>
    %56 = arith.addi %46, %50 : i32
    %57 = vector.broadcast %56 : i32 to vector<1x640xi32>
    %58 = arith.subi %57, %7 : vector<1x640xi32>
    %59 = vector.broadcast %6 : vector<4x1xi32> to vector<4x640xi32>
    %60 = vector.broadcast %58 : vector<1x640xi32> to vector<4x640xi32>
    %61 = arith.cmpi slt, %59, %60 : vector<4x640xi32>
    %62 = arith.andi %55, %61 : vector<4x640xi1>
    %63 = arith.ori %42, %62 : vector<4x640xi1>
    %c2_i32_16 = arith.constant 2 : i32
    %64 = arith.muli %10, %c2_i32_16 : i32
    %c1_i32_17 = arith.constant 1 : i32
    %65 = arith.addi %64, %c1_i32_17 : i32
    %66 = arith.index_cast %65 : i32 to index
    %67 = memref.load %arg4[%66] : memref<4xi32, #tpu.memory_space<smem>>
    %c2_i32_18 = arith.constant 2 : i32
    %68 = arith.muli %10, %c2_i32_18 : i32
    %c1_i32_19 = arith.constant 1 : i32
    %69 = arith.addi %68, %c1_i32_19 : i32
    %70 = arith.index_cast %69 : i32 to index
    %71 = memref.load %arg5[%70] : memref<4xi32, #tpu.memory_space<smem>>
    %72 = vector.broadcast %67 : i32 to vector<1x640xi32>
    %73 = arith.subi %72, %7 : vector<1x640xi32>
    %74 = vector.broadcast %73 : vector<1x640xi32> to vector<4x640xi32>
    %75 = vector.broadcast %6 : vector<4x1xi32> to vector<4x640xi32>
    %76 = arith.cmpi sle, %74, %75 : vector<4x640xi32>
    %77 = arith.addi %67, %71 : i32
    %78 = vector.broadcast %77 : i32 to vector<1x640xi32>
    %79 = arith.subi %78, %7 : vector<1x640xi32>
    %80 = vector.broadcast %6 : vector<4x1xi32> to vector<4x640xi32>
    %81 = vector.broadcast %79 : vector<1x640xi32> to vector<4x640xi32>
    %82 = arith.cmpi slt, %80, %81 : vector<4x640xi32>
    %83 = arith.andi %76, %82 : vector<4x640xi1>
    %84 = arith.ori %63, %83 : vector<4x640xi1>
    %85 = vector.broadcast %41 : vector<1x640xi1> to vector<4x640xi1>
    %86 = arith.ori %85, %84 : vector<4x640xi1>
    %c0_20 = arith.constant 0 : index
    %c0_21 = arith.constant 0 : index
    %c0_22 = arith.constant 0 : index
    %87 = vector.load %arg8[%c0_20, %c0_21, %c0_22] : memref<1x4x640xf32, #tpu.memory_space<vmem>>, vector<1x4x640xf32>
    %88 = vector.shape_cast %87 : vector<1x4x640xf32> to vector<4x640xf32>
    %cst = arith.constant 0.000000e+00 : f32
    %89 = vector.broadcast %cst : f32 to vector<4x640xf32>
    %90 = arith.select %86, %89, %88 : vector<4x640xi1>, vector<4x640xf32>
    %c0_23 = arith.constant 0 : index
    %c0_24 = arith.constant 0 : index
    %c0_25 = arith.constant 0 : index
    %91 = vector.load %arg9[%c0_23, %c0_24, %c0_25] : memref<1x4x640xf32, #tpu.memory_space<vmem>>, vector<1x4x640xf32>
    %92 = vector.shape_cast %91 : vector<1x4x640xf32> to vector<4x640xf32>
    %93 = vector.shape_cast %90 : vector<4x640xf32> to vector<1x4x640xf32>
    tpu.vector_store %arg9[%c0_23, %c0_24, %c0_25], %93 {strides = array<i32>} : memref<1x4x640xf32, #tpu.memory_space<vmem>>, vector<1x4x640xf32>,
    return
  }
  func.func @transform_0(%arg0: i32, %arg1: i32, %arg2: memref<4xi32, #tpu.memory_space<smem>>, %arg3: memref<4xi32, #tpu.memory_space<smem>>, %arg4: memref<4xi32, #tpu.memory_space<smem>>, %arg5: memref<4xi32, #tpu.memory_space<smem>>) -> (i32, i32) {
    %c0_i32 = arith.constant 0 : i32
    %c0_i32_0 = arith.constant 0 : i32
    %c0_i32_1 = arith.constant 0 : i32
    return %c0_i32, %c0_i32_0 : i32, i32
  }
  func.func @transform_1(%arg0: i32, %arg1: i32, %arg2: memref<4xi32, #tpu.memory_space<smem>>, %arg3: memref<4xi32, #tpu.memory_space<smem>>, %arg4: memref<4xi32, #tpu.memory_space<smem>>, %arg5: memref<4xi32, #tpu.memory_space<smem>>) -> (i32, i32) {
    %c0_i32 = arith.constant 0 : i32
    %c0_i32_0 = arith.constant 0 : i32
    %c0_i32_1 = arith.constant 0 : i32
    return %c0_i32, %c0_i32_0 : i32, i32
  }
  func.func @transform_2(%arg0: i32, %arg1: i32, %arg2: memref<4xi32, #tpu.memory_space<smem>>, %arg3: memref<4xi32, #tpu.memory_space<smem>>, %arg4: memref<4xi32, #tpu.memory_space<smem>>, %arg5: memref<4xi32, #tpu.memory_space<smem>>) -> (i32, i32, i32) {
    %c0_i32 = arith.constant 0 : i32
    %c0_i32_0 = arith.constant 0 : i32
    return %arg0, %arg1, %c0_i32 : i32, i32, i32
  }
  func.func @transform_3(%arg0: i32, %arg1: i32, %arg2: memref<4xi32, #tpu.memory_space<smem>>, %arg3: memref<4xi32, #tpu.memory_space<smem>>, %arg4: memref<4xi32, #tpu.memory_space<smem>>, %arg5: memref<4xi32, #tpu.memory_space<smem>>) -> (i32, i32, i32) {
    %c0_i32 = arith.constant 0 : i32
    %c0_i32_0 = arith.constant 0 : i32
    return %arg0, %arg1, %c0_i32 : i32, i32, i32
  }
}

</mosaic_0001>

<bundles_post_ra>
// kernel: tpu_custom_call.1
= control target key start
LH: loop header
LB: loop body
LE: loop exit
PB: predicated region body
PF: predicated region fallthrough
CT: control target
= control target key end

     0   :  { %s841_s24 = smov [#allocation3]   ;;  %s1293_s0 = inlined_call_operand.hbm [shape: s32[4], index: 0, kind: input, shape index: {}]   ;;  %s1294_s4 = inlined_call_operand.vmem [shape: s32[1,640], index: 4, kind: input, shape index: {}]   ;;  %s1295_s5 = inlined_call_operand.hbm [shape: s32[1,640], index: 5, kind: input, shape index: {}]   ;;  %s1296_s6 = inlined_call_operand.hbm [shape: f32[2,4,640], index: 6, kind: input, shape index: {}]   ;;  %s1297_s7 = inlined_call_operand.hbm [shape: f32[2,4,640], index: 7, kind: output, shape index: {}]   ;;  %s1298_s1 = inlined_call_operand.vmem [shape: s32[4], index: 1, kind: input, shape index: {}]   ;;  %s1299_s2 = inlined_call_operand.vmem [shape: s32[4], index: 2, kind: input, shape index: {}]   ;;  %s1300_s3 = inlined_call_operand.hbm [shape: s32[4], index: 3, kind: input, shape index: {}]  }
   0x1   :  { %13 = dma.hbm_to_smem %s1293_s0, 16, %s841_s24, [#allocation2] }
   0x2   :  { %s14_s29 = sshll.u32 %s1298_s1, 4  ;;  %s18_s9 = sshll.u32 %s1299_s2, 4  ;;  %s15_s29 = int_to_ptr.vmem [resolvable:$true] %s14_s29  ;;  %s19_s9 = int_to_ptr.vmem [resolvable:$true] %s18_s9 }
   0x3   :  { %s667_s10 = scalar_lea.vmem %s15_s29, 16  ;;  %p672_p1 = scmp.lt.s32.totalorder %s15_s29, %s15_s29 }
   0x4   :  { %p668_p0 = scmp.ne.s32.totalorder %s15_s29, %s667_s10  ;;  %p673_p2 = scmp.lt.s32.totalorder %s667_s10, %s667_s10 }
   0x6   :  { %p674_p3 = por %p673_p2, %p672_p1 }
   0x8   :  { %p675_p4 = pnand %p674_p3, %p668_p0 }
   0xa   :  { %678 = shalt.err (!%p675_p4)  }
   0xb   :  { %s842_s11 = smov [#allocation4]   ;;  %s679_s0 = scalar_lea.vmem %s19_s9, 16 }
   0xc   :  { %17 = dma.vmem_to_smem %s15_s29, 16, %s842_s11, [#allocation2] }
   0xd   :  { %p680_p5 = scmp.ne.s32.totalorder %s19_s9, %s679_s0  ;;  %p684_p6 = scmp.lt.s32.totalorder %s19_s9, %s19_s9 }
   0xe   :  { %p685_p7 = scmp.lt.s32.totalorder %s679_s0, %s679_s0 }
  0x10   :  { %p686_p8 = por %p685_p7, %p684_p6 }
  0x12   :  { %p687_p9 = pnand %p686_p8, %p680_p5 }
  0x14   :  { %690 = shalt.err (!%p687_p9)  }
  0x15   :  { %s843_s1 = smov [#allocation5]   ;;  %s844_s2 = smov [#allocation6]  }
  0x16   :  { %21 = dma.vmem_to_smem %s19_s9, 16, %s843_s1, [#allocation2] }
  0x17   :  { %23 = dma.hbm_to_smem %s1300_s3, 16, %s844_s2, [#allocation2] }
  0x18   :  { %803 = dma.done.wait [#allocation2], 64 }
  0x19   :  { %804 = vsyncadd [#allocation2], 4294967232 }
  0x1a   :  { %25 = sfence }
  0x1b   :  { %26 = vsyncpa [#allocation8], 0 }
  0x1c   :  { %27 = vsyncpa [#allocation11], 0 }
  0x1d   :  { %29 = vsyncpa [#allocation11 + $0x1], 0 }
  0x1e   :  { %30 = vsyncpa [#allocation9], 0 }
  0x1f   :  { %32 = vsyncpa [#allocation9 + $0x1], 0  ;;  %s901_s14 = smov 0   ;;  %s903_s15 = smov 0  }
  0x20   :  { %s905_s16 = smov 0   ;;  %s907_s17 = smov 0  }
  0x21   :  { %s909_s18 = smov 0   ;;  %s911_s19 = smov 0  }
  0x22 LB: > { %s563_s3 = sadd.s32 4294967295, %s839_s19   ;;  %s564_s20 = sadd.s32 4294967294, %s839_s19   ;;  %s839_s19 = sphi %s911_s19, %s38_s19   ;;  %s835_s18 = sphi %s909_s18, %s1357_s18   ;;  %s831_s17 = sphi %s907_s17, %s1356_s17   ;;  %s827_s16 = sphi %s905_s16, %s1355_s16   ;;  %s823_s15 = sphi %s903_s15, %s1354_s15   ;;  %s819_s14 = sphi %s901_s14, %s1353_s14  }
  0x23   : > { %p114_p10 = scmp.ne.s32.totalorder %s823_s15, %s819_s14  ;;  %p935_p11 = scmp.eq.s32.totalorder %s563_s3, 0 }
  0x24   : > { %p939_p12 = scmp.eq.s32.totalorder %s563_s3, 1  ;;  %p146_p13 = scmp.eq.s32.totalorder %s564_s20, 1 }
  0x25   : > { %p945_p0 = por %p935_p11, %p114_p10  ;;  %p565_p1 = scmp.ge.s32.totalorder %s839_s19, 1 }
  0x26   : > { %p950_p2 = por %p146_p13, %p114_p10  ;;  %p153_p3 = scmp.lt.s32.totalorder %s839_s19, 3 }
  0x27   : > { %s1304_s23 = scalar_select %p945_p0, 1, 0 }
  0x28   : > { %s1305_s24 = scalar_select %p950_p2, 1, 0 }
  0x29   : > { %p955_p4 = pnand %p565_p1, %p153_p3  ;;  %s845_s26 = smov [#allocation7]  }
  0x2a   : > { %s169_s27 = sshll.u32 %s845_s26, 4  ;;  %s50_s29 = sadd.s32 1, %s835_s18  ;;  %s170_s27 = int_to_ptr.vmem [resolvable:$true] %s169_s27 }
  0x2b   : > { %p587_p6 = pneg %p955_p4  ;;  %s101_s30 = sadd.s32 1, %s827_s16 }
  0x2c   : > { %p52_p8 = scmp.ge.s32.totalorder %s50_s29, 2  ;;  %s710_s8 = scalar_lea.vmem %s170_s27, 80 }
  0x2d   : > { %p964_p7 = pnand %p587_p6, %p935_p11  ;;  %p711_p10 = scmp.ne.s32.totalorder %s170_s27, %s710_s8 }
  0x2e   : > { %s717_s9 = scalar_lea.vmem %s170_s27, 96  ;;  %p718_p3 = scmp.lt.s32.totalorder %s170_s27, %s170_s27 }
  0x2f   : > { %p701_p9 = pneg %p964_p7  ;;  %p719_p5 = scmp.lt.s32.totalorder %s717_s9, %s710_s8 }
  0x31   : > { %p713_p13 = pnand %p711_p10, %p701_p9  ;;  %p720_p2 = por %p719_p5, %p718_p3 }
  0x33   : > { %p714_p1 = pneg %p713_p13 }
  0x35   : > { %p721_p0 = pnand %p720_p2, %p714_p1 }
  0x37   : > { %724 = shalt.err (!%p721_p0)
}
  0x38   : > { %590 = dma.hbm_to_vmem [thread:$0]  (!%p964_p7), %s1295_s5, 80, %s170_s27, [#allocation8]  }
  0x39   : > { %s1359_s29 = smov (%p52_p8, %s50_s29), 0  ;;  %p108_p2 = scmp.ne.s32.totalorder %s827_s16, %s823_s15 }
  0x3a   : > { %p109_p0 = scmp.eq.s32.totalorder %s839_s19, 0  ;;  %s96_s0 = ssub.s32 %s835_s18, %s1359_s29 }
  0x3b   : > { %p600_p5 = scmp.lt.s32.totalorder %s839_s19, 2  ;;  %p99_p6 = scmp.eq.s32.totalorder %s96_s0, 0 }
  0x3c   : > { %p110_p9 = por %p109_p0, %p108_p2  ;;  %p987_p10 = por %p939_p12, %p108_p2 }
  0x3d   : > { %s180_s2 = sand.u32 1, %s827_s16   ;;  %s576_s3 = smul.u32 320, %s835_s18 }
  0x3e   : > { %s993_s12 = scalar_select %p99_p6, %s827_s16, %s101_s30  }
  0x3f   : > { %s575_s13 = smul.u32 20, %s180_s2  ;;  %p996_p7 = pnand %p600_p5, %p110_p9 }
  0x40   : > { %s192_s28 = scalar_lea.hbm %s1296_s6, %s576_s3  ;;  %s181_s9 = scalar_lea.sflag [#allocation11], %s180_s2 }
  0x41   : > { %s184_s8 = scalar_lea.vmem [#allocation10], %s575_s13  ;;  %p727_p12 = pneg %p996_p7 }
  0x42   : > { %s194_s22 = sshll.u32 %s184_s8, 4  ;;  %s846_s30 = smov [#allocation10]   ;;  %s195_s22 = int_to_ptr.vmem [resolvable:$true] %s194_s22 }
  0x43   : > { %s738_s10 = scalar_lea.vmem %s195_s22, 320  ;;  %s743_s11 = sshll.u32 %s846_s30, 4  ;;  %s744_s11 = int_to_ptr.vmem [resolvable:$false] %s743_s11 }
  0x44   : > { %p739_p8 = scmp.ne.s32.totalorder %s195_s22, %s738_s10  ;;  %s745_s0 = scalar_lea.vmem %s744_s11, 640 }
  0x45   : > { %p746_p3 = scmp.lt.s32.totalorder %s195_s22, %s744_s11  ;;  %p747_p2 = scmp.lt.s32.totalorder %s745_s0, %s738_s10 }
  0x46   : > { %p741_p13 = pnand %p739_p8, %p727_p12 }
  0x47   : > { %p748_p0 = por %p747_p2, %p746_p3 }
  0x48   : > { %p742_p1 = pneg %p741_p13 }
  0x4a   : > { %p749_p5 = pnand %p748_p0, %p742_p1 }
  0x4c   : > { %752 = shalt.err (!%p749_p5)
}
  0x4d   : > { %594 = dma.hbm_to_vmem [thread:$0]  (!%p996_p7), %s192_s28, 320, %s195_s22, %s181_s9  }
  0x4e   : > { %203 = sbr.rel (%p955_p4) target bundleno = 147 (0x93), region = 32 }
  0x53   : > { %806 = dma.done.wait (%p935_p11), [#allocation8], 80  }
  0x54   : > { %808 = vsyncadd (%p935_p11), [#allocation8], 4294967216  ;;  %s1014_s2 = sand.u32 1, %s823_s15   ;;  %p1310_p6 = scmp.ne.s32.totalorder %s1304_s23, 0 }
  0x55   : > { %s577_s13 = smul.u32 20, %s1014_s2  ;;  %s210_s3 = scalar_lea.sflag [#allocation11], %s1014_s2 }
  0x57   : > { %s1020_s20 = scalar_lea.vmem [#allocation10], %s577_s13 }
  0x58   : > { %810 = dma.done.wait (%p1310_p6), %s210_s3, 320  }
  0x59   : > { %812 = vsyncadd (%p1310_p6), %s210_s3, 4294966976  ;;  %p244_p11 = scmp.lt.s32.totalorder %s831_s17, 1  ;;  %v237_v0 = vlaneseq  ;;  %v236_v1 = vld [vmem:[%s1294_s4] sm:$0x1f]  ;;  %v243_v4 = vld [vmem:[#allocation7] sm:$0x1f] }
  0x5a   : > { %v847_v23 = vmov 0   ;;  %v425_v41 = vld [vmem:[%s1020_s20] sm:$0xff]  ;;  %s451_s9 = scalar_lea.sflag [#allocation9], %s1014_s2 }
  0x5b   : > { %s245_s21 = scalar_select %p244_p11, %s831_s17, 1  ;;  %v1031_v2 = vshrl.u32 %v237_v0, 7  ;;  %v430_v50 = vcombine.high %v425_v41, %v425_v41 }
  0x5d   : > { %s571_s25 = sshll.u32 %s245_s21, 1  ;;  %v271_v7 = vsub.s32 0, %v1031_v2  ;;  %v275_v8 = vsub.s32 1, %v1031_v2  ;;  %v1042_v13 = vmul.u32 8, %v1031_v2  ;;  %v279_v25 = vsub.s32 2, %v1031_v2 }
  0x5e   : > { %s247_s26 = sld [smem:[#allocation3 + %s571_s25]]  ;;  %s255_s27 = sadd.s32 1, %s571_s25  ;;  %v283_v33 = vsub.s32 3, %v1031_v2  ;;  %v287_v55 = vsub.s32 4, %v1031_v2 }
  0x5f   : > { %s248_s28 = sld [smem:[#allocation4 + %s571_s25]] }
  0x60   : > { %s256_s8 = sld [smem:[#allocation3 + %s255_s27]] }
  0x61   : > { %s257_s22 = sld [smem:[#allocation4 + %s255_s27]] }
  0x62   : > { %s265_s30 = sld [smem:[#allocation5 + %s571_s25]] }
  0x63   : > { %s266_s23 = sld [smem:[#allocation6 + %s571_s25]] }
  0x64   : > { %v249_v3 = vstv %s247_s26  ;;  %s327_s11 = sld [smem:[#allocation5 + %s255_s27]] }
  0x65   : > { %vm250_vm0 = vcmp.le.s32.totalorder %v249_v3, %v236_v1  ;;  %s251_s0 = sadd.s32 %s248_s28, %s247_s26  ;;  %s328_s3 = sld [smem:[#allocation6 + %s255_s27]]  ;;  %v426_v3 = vld [vmem:[%s1020_s20 + $0x8] sm:$0xff] }
  0x66   : > { %v252_v5 = vstv %s251_s0  ;;  %v258_v6 = vstv %s256_s8  ;;  %s1209_s27 = scalar_lea.vmem [#allocation12], %s577_s13  ;;  %s578_s13 = smul.u32 320, %s831_s17 }
  0x67   : > { %vm253_vm1 = vcmp.lt.s32.totalorder %v236_v1, %v252_v5  ;;  %vm259_vm2 = vcmp.le.s32.totalorder %v258_v6, %v236_v1  ;;  %s260_s21 = sadd.s32 %s257_s22, %s256_s8  ;;  %s467_s28 = sshll.u32 %s1209_s27, 4  ;;  %s1246_s28 = int_to_ptr.vmem [resolvable:$true] %s467_s28 }
  0x68   : > { %vm1035_vm3 = vmand %vm250_vm0, %vm253_vm1  ;;  %v261_v10 = vstv %s260_s21  ;;  %v267_v11 = vstv %s265_s30  ;;  %s465_s22 = scalar_lea.hbm %s1297_s7, %s578_s13  ;;  %s753_s10 = scalar_lea.vmem %s1246_s28, 320 }
  0x69   : > { %vm262_vm4 = vcmp.lt.s32.totalorder %v236_v1, %v261_v10  ;;  %v1039_v12 = vsub.s32 %v267_v11, %v243_v4  ;;  %s294_s25 = sadd.s32 %s266_s23, %s265_s30  ;;  %p754_p4 = scmp.ne.s32.totalorder %s1246_s28, %s753_s10 }
  0x6a   : > { %vm263_vm5 = vmand %vm259_vm2, %vm262_vm4  ;;  %v295_v14 = vstv %s294_s25  ;;  %v329_v15 = vstv %s327_s11 }
  0x6b   : > { %vm264_vm6 = vmor %vm1035_vm3, %vm263_vm5  ;;  %v272_v16 = vrot.slane %v1039_v12, %v271_v7  ;;  %v276_v17 = vrot.slane %v1039_v12, %v275_v8  ;;  %v1048_v18 = vsub.s32 %v295_v14, %v243_v4  ;;  %v1050_v19 = vsub.s32 %v329_v15, %v243_v4  ;;  %s356_s26 = sadd.s32 %s328_s3, %s327_s11  ;;  %p755_p9 = pnand %p754_p4, %p987_p10 }
  0x6c   : > { %v357_v20 = vstv %s356_s26  ;;  %v1054_v24 = vsel %vm264_vm6, 1, %v847_v23  ;;  %v280_v42 = vrot.slane %v1039_v12, %v279_v25  ;;  %v284_v44 = vrot.slane %v1039_v12, %v283_v33 }
  0x6d   : > { %v300_v21 = vrot.slane %v1048_v18, %v271_v7  ;;  %v304_v22 = vrot.slane %v1048_v18, %v275_v8  ;;  %vm1058_vm7 = vcmp.le.s32.totalorder %v272_v16, %v1042_v13  ;;  %v334_v27 = vrot.slane %v1050_v19, %v271_v7  ;;  %v427_v16 = vld [vmem:[%s1020_s20 + $0x10] sm:$0xf]  ;;  %p756_p7 = pneg %p755_p9  ;;  %s848_s20 = smov [#allocation12]  }
  0x6e   : > { %v338_v28 = vrot.slane %v1050_v19, %v275_v8  ;;  %v1064_v29 = vsub.s32 %v357_v20, %v243_v4  ;;  %vm1067_vm8 = vcmp.le.s32.totalorder %v276_v17, %v1042_v13  ;;  %v398_v37 = vrot.slane %v1054_v24, %v271_v7  ;;  %s757_s30 = sshll.u32 %s848_s20, 4  ;;  %s758_s30 = int_to_ptr.vmem [resolvable:$false] %s757_s30 }
  0x6f   : > { %vm1072_vm9 = vcmp.lt.s32.totalorder %v1042_v13, %v300_v21  ;;  %vm1077_vm10 = vcmp.lt.s32.totalorder %v1042_v13, %v304_v22  ;;  %vm1083_vm11 = vcmp.le.s32.totalorder %v334_v27, %v1042_v13  ;;  %v402_v39 = vrot.slane %v1054_v24, %v275_v8  ;;  %s759_s23 = scalar_lea.vmem %s758_s30, 640  ;;  %p760_p12 = scmp.lt.s32.totalorder %s1246_s28, %s758_s30 }
  0x70   : > { %v362_v35 = vrot.slane %v1064_v29, %v271_v7  ;;  %v366_v36 = vrot.slane %v1064_v29, %v275_v8  ;;  %vm322_vm12 = vmand %vm1058_vm7, %vm1072_vm9  ;;  %vm1095_vm13 = vcmp.le.s32.totalorder %v338_v28, %v1042_v13  ;;  %v308_v43 = vrot.slane %v1048_v18, %v279_v25  ;;  %p761_p8 = scmp.lt.s32.totalorder %s759_s23, %s753_s10 }
  0x71   : > { %vm323_vm14 = vmand %vm1067_vm8, %vm1077_vm10  ;;  %v312_v45 = vrot.slane %v1048_v18, %v283_v33  ;;  %vm1121_vm3 = vcmp.eq.s32.totalorder %v398_v37, 1  ;;  %v342_v47 = vrot.slane %v1050_v19, %v279_v25  ;;  %v370_v48 = vrot.slane %v1064_v29, %v279_v25 }
  0x72   : > { %vm379_vm15 = vcmp.lt.s32.totalorder %v1042_v13, %v362_v35  ;;  %vm1106_vm0 = vcmp.lt.s32.totalorder %v1042_v13, %v366_v36  ;;  %vm1132_vm5 = vcmp.eq.s32.totalorder %v402_v39, 1  ;;  %v346_v51 = vrot.slane %v1050_v19, %v283_v33  ;;  %p762_p13 = por %p761_p8, %p760_p12 }
  0x73   : > { %vm384_vm1 = vmand %vm1083_vm11, %vm379_vm15  ;;  %v374_v52 = vrot.slane %v1064_v29, %v283_v33  ;;  %vm1144_vm11 = vcmp.le.s32.totalorder %v280_v42, %v1042_v13  ;;  %vm1149_vm7 = vcmp.lt.s32.totalorder %v1042_v13, %v308_v43  ;;  %vm1162_vm8 = vcmp.lt.s32.totalorder %v1042_v13, %v312_v45 }
  0x74   : > { %vm385_vm2 = vmand %vm1095_vm13, %vm1106_vm0  ;;  %vm1169_vm13 = vcmp.le.s32.totalorder %v342_v47, %v1042_v13  ;;  %v406_v61 = vrot.slane %v1054_v24, %v279_v25  ;;  %vm1184_vm0 = vcmp.le.s32.totalorder %v346_v51, %v1042_v13  ;;  %v410_v1 = vrot.slane %v1054_v24, %v283_v33  ;;  %p763_p1 = pnand %p762_p13, %p756_p7 }
  0x75   : > { %vm389_vm4 = vmor %vm322_vm12, %vm384_vm1  ;;  %vm1157_vm12 = vcmp.le.s32.totalorder %v284_v44, %v1042_v13  ;;  %vm1189_vm1 = vcmp.lt.s32.totalorder %v1042_v13, %v374_v52  ;;  %v288_v4 = vrot.slane %v1039_v12, %v287_v55  ;;  %v316_v5 = vrot.slane %v1048_v18, %v287_v55 }
  0x76   : > { %vm390_vm6 = vmor %vm323_vm14, %vm385_vm2  ;;  %vm1174_vm14 = vcmp.lt.s32.totalorder %v1042_v13, %v370_v48  ;;  %v350_v6 = vrot.slane %v1050_v19, %v287_v55  ;;  %v378_v7 = vrot.slane %v1064_v29, %v287_v55  ;;  %v431_v8 = vcombine.high %v426_v3, %v426_v3 }
  0x77   : > { %vm420_vm9 = vmor %vm1121_vm3, %vm389_vm4  ;;  %v414_v9 = vrot.slane %v1054_v24, %v287_v55 }
  0x78   : > { %vm421_vm10 = vmor %vm1132_vm5, %vm390_vm6  ;;  %v434_v58 = vsel %vm420_vm9, 0.0, %v425_v41  ;;  %vm417_vm5 = vcmp.eq.s32.totalorder %v406_v61, 1  ;;  %vm418_vm9 = vcmp.eq.s32.totalorder %v410_v1, 1 }
  0x79   : > { %v435_v62 = vsel %vm421_vm10, 0.0, %v430_v50  ;;  %vm324_vm15 = vmand %vm1144_vm11, %vm1149_vm7  ;;  %vm355_vm7 = vcmp.le.s32.totalorder %v350_v6, %v1042_v13 }
  0x7a   : > { %v443_v2 = vcombine.low %v434_v58, %v435_v62  ;;  %vm325_vm2 = vmand %vm1157_vm12, %vm1162_vm8  ;;  %vm419_vm8 = vcmp.eq.s32.totalorder %v414_v9, 1 }
  0x7b   : > { %vm386_vm3 = vmand %vm1169_vm13, %vm1174_vm14  ;;  %vm1228_vm13 = vcmp.le.s32.totalorder %v288_v4, %v1042_v13  ;;  %vm1233_vm14 = vcmp.lt.s32.totalorder %v1042_v13, %v316_v5 }
  0x7c   : > { %447 = vst [vmem:[%s1209_s27] sm:$0xff] %v443_v2  ;;  %vm387_vm4 = vmand %vm1184_vm0, %vm1189_vm1 }
  0x7d   : > { %vm391_vm6 = vmor %vm324_vm15, %vm386_vm3  ;;  %vm383_vm15 = vcmp.lt.s32.totalorder %v1042_v13, %v378_v7 }
  0x7e   : > { %vm392_vm10 = vmor %vm325_vm2, %vm387_vm4 }
  0x7f   : > { %vm422_vm11 = vmor %vm417_vm5, %vm391_vm6 }
  0x80   : > { %vm423_vm0 = vmor %vm418_vm9, %vm392_vm10  ;;  %v436_v12 = vsel %vm422_vm11, 0.0, %v426_v3 }
  0x81   : > { %v437_v14 = vsel %vm423_vm0, 0.0, %v431_v8  ;;  %vm326_vm12 = vmand %vm1228_vm13, %vm1233_vm14 }
  0x82   : > { %v444_v15 = vcombine.low %v436_v12, %v437_v14  ;;  %vm388_vm1 = vmand %vm355_vm7, %vm383_vm15 }
  0x83   : > { %vm393_vm2 = vmor %vm326_vm12, %vm388_vm1 }
  0x84   : > { %448 = vst [vmem:[%s1209_s27 + $0x8] sm:$0xff] %v444_v15  ;;  %vm424_vm3 = vmor %vm419_vm8, %vm393_vm2 }
  0x85   : > { %v438_v13 = vsel %vm424_vm3, 0.0, %v427_v16 }
  0x86   : > { %449 = vst [vmem:[%s1209_s27 + $0x10] sm:$0xf] %v438_v13 }
  0x87   : > { %766 = shalt.err (!%p763_p1)
}
  0x88   : > { %s767_s11 = scalar_lea.hbm %s465_s22, 320  ;;  %s771_s3 = scalar_lea.hbm %s1297_s7, 640 }
  0x89   : > { %p768_p3 = scmp.ne.s32.totalorder %s465_s22, %s767_s11  ;;  %p772_p5 = scmp.lt.s32.totalorder %s465_s22, %s1297_s7 }
  0x8a   : > { %p773_p6 = scmp.lt.s32.totalorder %s771_s3, %s767_s11 }
  0x8b   : > { %p769_p2 = pnand %p768_p3, %p987_p10 }
  0x8c   : > { %p774_p11 = por %p773_p6, %p772_p5 }
  0x8d   : > { %p770_p0 = pneg %p769_p2 }
  0x8f   : > { %p775_p4 = pnand %p774_p11, %p770_p0 }
  0x91   : > { %778 = shalt.err (!%p775_p4)
}
  0x92   : > { %585 = dma.vmem_to_hbm [thread:$0]  (%p987_p10), %s1246_s28, 320, %s465_s22, %s451_s9  }
  0x93 PF: > { %s479_s26 = sand.u32 1, %s819_s14   ;;  %p1351_p9 = scmp.ne.s32.totalorder %s1305_s24, 0 }
  0x94   : > { %p1352_p7 = scmp.ge.s32.totalorder %s839_s19, 2  ;;  %s480_s27 = scalar_lea.sflag [#allocation9], %s479_s26 }
  0x96   : > { %p596_p12 = pnand %p1352_p7, %p1351_p9 }
  0x98   : > { %p597_p8 = pneg %p596_p12 }
  0x9a   : > { %814 = dma.done.wait (%p597_p8), %s480_s27, 320  }
  0x9b   : > { %816 = vsyncadd (%p597_p8), %s480_s27, 4294966976  ;;  %s38_s19 = sadd.s32 1, %s839_s19   ;;  %s1353_s14 = smov %s823_s15 }
  0x9c   : > { %p35_p13 = scmp.ge.s32.totalorder %s38_s19, 4   ;;  %s1354_s15 = smov %s827_s16 }
  0x9d   : > { %s1355_s16 = smov %s993_s12  ;;  %s1356_s17 = smov %s835_s18 }
  0x9e   : > { %s1357_s18 = smov %s1359_s29  ;;  %37 = sbr.rel (!%p35_p13) target bundleno = 34 (0x22), region = 82 }
  0xa3   :  { %485 = vsyncpa [#allocation8], 1 }
  0xa4   :  { %487 = vsyncpa [#allocation8 + $0x1], 1 }
  0xa5   :  { %488 = vsyncpa [#allocation11], 1 }
  0xa6   :  { %490 = vsyncpa [#allocation11 + $0x1], 1 }
  0xa7   :  { %491 = vsyncpa [#allocation9], 1 }
  0xa8   :  { %493 = vsyncpa [#allocation9 + $0x1], 1 }

</bundles_post_ra>
